<compile_context>
chip_gen: v7x
topology: tpu7x:2x2x1
jax: 0.10.0
libtpu: 0.0.40
codegen_flags: <defaults>
</compile_context>

<pallas_src>
import jax
import jax.numpy as jnp
from jax.experimental import pallas as pl
from jax.experimental.pallas import tpu as pltpu


def _round_up(x, m):
    return (x + m - 1) // m * m


# ---------------------------------------------------------------------------
# Pallas kernels
# ---------------------------------------------------------------------------
def _conv_relu_pool_kernel(w_ref, b_ref, p0_ref, p1_ref, p2_ref, p3_ref, o_ref):
    """o = relu(max_over_pool_taps(W @ patch_tap) + bias), lane-dense output."""
    w = w_ref[...]                                           # (OC, CKK) bf16

    def tap(p_ref):
        return jnp.dot(w, p_ref[...], preferred_element_type=jnp.float32)

    y = jnp.maximum(jnp.maximum(tap(p0_ref), tap(p1_ref)),
                    jnp.maximum(tap(p2_ref), tap(p3_ref)))   # 2x2 max-pool
    y = jnp.maximum(y + b_ref[...], 0.0)                     # bias + relu
    o_ref[...] = y.astype(o_ref.dtype)


def _fc_stack_kernel(x_ref, w1_ref, b1_ref, w2_ref, b2_ref, w3_ref, b3_ref,
                     o_ref):
    """Fused fc1+relu, fc2+relu, out+softmax for one row tile."""
    h = jnp.dot(x_ref[...], w1_ref[...], preferred_element_type=jnp.float32)
    h = jnp.maximum(h + b1_ref[...], 0.0)
    h = jnp.dot(h.astype(jnp.bfloat16), w2_ref[...],
                preferred_element_type=jnp.float32)
    h = jnp.maximum(h + b2_ref[...], 0.0)
    z = jnp.dot(h.astype(jnp.bfloat16), w3_ref[...],
                preferred_element_type=jnp.float32)
    z = z + b3_ref[...]
    z = z - jnp.max(z, axis=-1, keepdims=True)
    e = jnp.exp(z)
    inv = pl.reciprocal(jnp.sum(e, axis=-1, keepdims=True), approx=True)
    o_ref[...] = (e * inv).astype(o_ref.dtype)


# ---------------------------------------------------------------------------
# Wrappers around pallas_call
# ---------------------------------------------------------------------------
def conv_relu_pool(patches, w_flat, bias, *, lane_tile=512):
    """patches: 4 arrays (CKK, M) bf16 (one per 2x2 pool tap);
    w_flat: (OC, CKK); bias: (OC,).  Returns (OC, M) f32 pooled activation."""
    oc, k = w_flat.shape
    m = patches[0].shape[1]
    tm = min(lane_tile, _round_up(m, 128))
    mp = _round_up(m, tm)
    patches = [jnp.pad(p, ((0, 0), (0, mp - m))) for p in patches]

    out = pl.pallas_call(
        _conv_relu_pool_kernel,
        out_shape=jax.ShapeDtypeStruct((oc, mp), jnp.float32),
        grid=(mp // tm,),
        in_specs=[
            pl.BlockSpec((oc, k), lambda i: (0, 0)),   # weights, resident
            pl.BlockSpec((oc, 1), lambda i: (0, 0)),   # bias, resident
        ] + [pl.BlockSpec((k, tm), lambda i: (0, i))] * 4,
        out_specs=pl.BlockSpec((oc, tm), lambda i: (0, i)),
        compiler_params=pltpu.CompilerParams(
            dimension_semantics=("parallel",)),
    )(w_flat.astype(jnp.bfloat16),
      bias.reshape(oc, 1).astype(jnp.float32),
      *patches)
    return out[:, :m]


def fc_stack_softmax(x, w1, b1, w2, b2, w3, b3, *, row_tile=256):
    """softmax(relu(relu(x@w1+b1)@w2+b2)@w3+b3), fused, row-tiled."""
    n, d = x.shape
    tn = min(row_tile, _round_up(n, 8))
    n_pad = _round_up(n, tn)
    x = jnp.pad(x, ((0, n_pad - n), (0, 0)))
    h1, h2, c = w1.shape[1], w2.shape[1], w3.shape[1]

    out = pl.pallas_call(
        _fc_stack_kernel,
        out_shape=jax.ShapeDtypeStruct((n_pad, c), jnp.float32),
        grid=(n_pad // tn,),
        in_specs=[
            pl.BlockSpec((tn, d), lambda i: (i, 0)),
            pl.BlockSpec((d, h1), lambda i: (0, 0)),
            pl.BlockSpec((1, h1), lambda i: (0, 0)),
            pl.BlockSpec((h1, h2), lambda i: (0, 0)),
            pl.BlockSpec((1, h2), lambda i: (0, 0)),
            pl.BlockSpec((h2, c), lambda i: (0, 0)),
            pl.BlockSpec((1, c), lambda i: (0, 0)),
        ],
        out_specs=pl.BlockSpec((tn, c), lambda i: (i, 0)),
        compiler_params=pltpu.CompilerParams(
            dimension_semantics=("parallel",)),
    )(x.astype(jnp.bfloat16),
      w1.astype(jnp.bfloat16), b1.reshape(1, h1).astype(jnp.float32),
      w2.astype(jnp.bfloat16), b2.reshape(1, h2).astype(jnp.float32),
      w3.astype(jnp.bfloat16), b3.reshape(1, c).astype(jnp.float32))
    return out[:n]


# ---------------------------------------------------------------------------
# Glue: per-pool-tap im2col (pure reshuffle, no compute)
# ---------------------------------------------------------------------------
def _pool_tap_patches(x_cnhw, k, pool):
    """x_cnhw: (C, N, H, W), already zero-padded for the conv.

    Returns pool*pool patch matrices (one per 2x2 pool tap), each of shape
    (C*k*k, N*PH*PW): patch features (c, ki, kj) on rows, pooled output
    pixels (n, ph, pw) on columns/lanes.  Also returns (PH, PW)."""
    c, n, h, w = x_cnhw.shape
    oh, ow = h - k + 1, w - k + 1
    ph, pw = oh // pool, ow // pool
    taps = []
    for py in range(pool):
        for px in range(pool):
            cols = []
            for ki in range(k):
                for kj in range(k):
                    hs, ws = py + ki, px + kj
                    cols.append(
                        x_cnhw[:, :,
                               hs:hs + (ph - 1) * pool + 1:pool,
                               ws:ws + (pw - 1) * pool + 1:pool])  # (C,N,PH,PW)
            t = jnp.stack(cols, axis=1)                    # (C, k*k, N, PH, PW)
            taps.append(t.reshape(c * k * k, n * ph * pw).astype(jnp.bfloat16))
    return taps, ph, pw


# ---------------------------------------------------------------------------
# LeNet-5 forward
# ---------------------------------------------------------------------------
def init_params(key):
    ks = jax.random.split(key, 10)

    def u(kk, shape, fan_in):
        bound = 1.0 / jnp.sqrt(fan_in)
        return jax.random.uniform(kk, shape, jnp.float32, -bound, bound)

    return {
        "conv1_w": u(ks[0], (6, 3, 5, 5), 3 * 5 * 5),
        "conv1_b": u(ks[1], (6,), 3 * 5 * 5),
        "conv2_w": u(ks[2], (16, 6, 5, 5), 6 * 5 * 5),
        "conv2_b": u(ks[3], (16,), 6 * 5 * 5),
        "fc1_w":   u(ks[4], (120, 400), 400),
        "fc1_b":   u(ks[5], (120,), 400),
        "fc2_w":   u(ks[6], (84, 120), 120),
        "fc2_b":   u(ks[7], (84,), 120),
        "out_w":   u(ks[8], (10, 84), 84),
        "out_b":   u(ks[9], (10,), 84),
    }


def lenet5_forward(x, params):
    # x: (N, 3, 28, 28)  (28x28 forced by fc1 expecting 16*5*5 = 400 features)
    n = x.shape[0]

    # conv1 (k=5, pad=2) + relu + pool1  ->  (6, N*14*14)
    xc = jnp.transpose(x, (1, 0, 2, 3))                     # (3, N, 28, 28)
    xc = jnp.pad(xc, ((0, 0), (0, 0), (2, 2), (2, 2)))      # (3, N, 32, 32)
    taps1, ph1, pw1 = _pool_tap_patches(xc, k=5, pool=2)
    w1 = params["conv1_w"].reshape(6, -1)                   # (6, 75)
    pool1 = conv_relu_pool(taps1, w1, params["conv1_b"])    # (6, N*196)

    # conv2 (k=5, pad=0) + relu + pool2  ->  (16, N*5*5)
    p1 = pool1.reshape(6, n, ph1, pw1)
    taps2, ph2, pw2 = _pool_tap_patches(p1, k=5, pool=2)
    w2 = params["conv2_w"].reshape(16, -1)                  # (16, 150)
    pool2 = conv_relu_pool(taps2, w2, params["conv2_b"])    # (16, N*25)

    # flatten in PyTorch (N, C*H*W) order (pool2.view(N, -1))
    flat = pool2.reshape(16, n, ph2, pw2).transpose(1, 0, 2, 3).reshape(n, 400)

    # fc1 + relu, fc2 + relu, out + softmax : single fused kernel
    return fc_stack_softmax(
        flat,
        params["fc1_w"].T, params["fc1_b"],
        params["fc2_w"].T, params["fc2_b"],
        params["out_w"].T, params["out_b"])


# ---------------------------------------------------------------------------
# Pure-JAX reference (for a loose sanity check only)
# ---------------------------------------------------------------------------
def _reference_forward(x, params):
    c1 = jax.lax.conv_general_dilated(
        x, params["conv1_w"], (1, 1), ((2, 2), (2, 2)),
        dimension_numbers=("NCHW", "OIHW", "NCHW"))
    c1 = jax.nn.relu(c1 + params["conv1_b"][None, :, None, None])
    p1 = jax.lax.reduce_window(c1, -jnp.inf, jax.lax.max,
                               (1, 1, 2, 2), (1, 1, 2, 2), "VALID")
    c2 = jax.lax.conv_general_dilated(
        p1, params["conv2_w"], (1, 1), ((0, 0), (0, 0)),
        dimension_numbers=("NCHW", "OIHW", "NCHW"))
    c2 = jax.nn.relu(c2 + params["conv2_b"][None, :, None, None])
    p2 = jax.lax.reduce_window(c2, -jnp.inf, jax.lax.max,
                               (1, 1, 2, 2), (1, 1, 2, 2), "VALID")
    flat = p2.reshape(p2.shape[0], -1)
    f1 = jax.nn.relu(flat @ params["fc1_w"].T + params["fc1_b"])
    f2 = jax.nn.relu(f1 @ params["fc2_w"].T + params["fc2_b"])
    z = f2 @ params["out_w"].T + params["out_b"]
    return jax.nn.softmax(z, axis=1)


if __name__ == "__main__":
    key = jax.random.PRNGKey(0)
    kp, kx = jax.random.split(key)
    params = init_params(kp)
    # Smallest shape consistent with the module: batch=2, 3x28x28 images.
    x = jax.random.normal(kx, (2, 3, 28, 28), jnp.float32)

    out = jax.jit(lenet5_forward)(x, params)
    out = jax.block_until_ready(out)

    assert out.shape == (2, 10)
    # softmax rows sum to ~1 (bf16 operands + approx reciprocal => loose tol)
    assert bool(jnp.allclose(jnp.sum(out, axis=1), 1.0, atol=1e-2))
    # loose agreement with an f32 pure-JAX reference
    ref = _reference_forward(x, params)
    assert bool(jnp.allclose(out, ref, atol=3e-2))
    print("KERNEL_OK")
</pallas_src>

<mosaic_0001>
module attributes {stable_mosaic.version = 11 : i64} {
  func.func @_conv_relu_pool_kernel(%arg0: i32, %arg1: memref<6x75xbf16, #tpu.memory_space<vmem>>, %arg2: memref<6x1xf32, #tpu.memory_space<vmem>>, %arg3: memref<75x512xbf16, #tpu.memory_space<vmem>>, %arg4: memref<75x512xbf16, #tpu.memory_space<vmem>>, %arg5: memref<75x512xbf16, #tpu.memory_space<vmem>>, %arg6: memref<75x512xbf16, #tpu.memory_space<vmem>>, %arg7: memref<6x512xf32, #tpu.memory_space<vmem>>) attributes {dimension_semantics = [#tpu.dimension_semantics<parallel>], iteration_bounds = array<i64: 1>, scalar_prefetch = 0 : i64, scratch_operands = 0 : i64, tpu.core_type = #tpu.core_type<tc>, window_params = [{pipeline_mode = #tpu.pipeline_mode<synchronous>, transform_indices = @transform_0, window_bounds = array<i64: 6, 75>}, {pipeline_mode = #tpu.pipeline_mode<synchronous>, transform_indices = @transform_1, window_bounds = array<i64: 6, 1>}, {transform_indices = @transform_2, window_bounds = array<i64: 75, 512>}, {transform_indices = @transform_3, window_bounds = array<i64: 75, 512>}, {transform_indices = @transform_4, window_bounds = array<i64: 75, 512>}, {transform_indices = @transform_5, window_bounds = array<i64: 75, 512>}, {transform_indices = @transform_6, window_bounds = array<i64: 6, 512>}]} {
    %c0 = arith.constant 0 : index
    %c0_0 = arith.constant 0 : index
    %0 = vector.load %arg1[%c0, %c0_0] : memref<6x75xbf16, #tpu.memory_space<vmem>>, vector<6x75xbf16>
    %c0_1 = arith.constant 0 : index
    %c0_2 = arith.constant 0 : index
    %1 = vector.load %arg3[%c0_1, %c0_2] : memref<75x512xbf16, #tpu.memory_space<vmem>>, vector<75x512xbf16>
    %cst = arith.constant dense<0.000000e+00> : vector<6x512xf32>
    %2 = tpu.matmul %0, %1, %cst {dimension_numbers = #tpu.dot_dimension_numbers<[1], [0], [0], [1], [0, 0, 1, 1], [], []>} : vector<6x75xbf16>, vector<75x512xbf16>, vector<6x512xf32> -> vector<6x512xf32>
    %c0_3 = arith.constant 0 : index
    %c0_4 = arith.constant 0 : index
    %3 = vector.load %arg4[%c0_3, %c0_4] : memref<75x512xbf16, #tpu.memory_space<vmem>>, vector<75x512xbf16>
    %cst_5 = arith.constant dense<0.000000e+00> : vector<6x512xf32>
    %4 = tpu.matmul %0, %3, %cst_5 {dimension_numbers = #tpu.dot_dimension_numbers<[1], [0], [0], [1], [0, 0, 1, 1], [], []>} : vector<6x75xbf16>, vector<75x512xbf16>, vector<6x512xf32> -> vector<6x512xf32>
    %5 = arith.maximumf %2, %4 : vector<6x512xf32>
    %c0_6 = arith.constant 0 : index
    %c0_7 = arith.constant 0 : index
    %6 = vector.load %arg5[%c0_6, %c0_7] : memref<75x512xbf16, #tpu.memory_space<vmem>>, vector<75x512xbf16>
    %cst_8 = arith.constant dense<0.000000e+00> : vector<6x512xf32>
    %7 = tpu.matmul %0, %6, %cst_8 {dimension_numbers = #tpu.dot_dimension_numbers<[1], [0], [0], [1], [0, 0, 1, 1], [], []>} : vector<6x75xbf16>, vector<75x512xbf16>, vector<6x512xf32> -> vector<6x512xf32>
    %c0_9 = arith.constant 0 : index
    %c0_10 = arith.constant 0 : index
    %8 = vector.load %arg6[%c0_9, %c0_10] : memref<75x512xbf16, #tpu.memory_space<vmem>>, vector<75x512xbf16>
    %cst_11 = arith.constant dense<0.000000e+00> : vector<6x512xf32>
    %9 = tpu.matmul %0, %8, %cst_11 {dimension_numbers = #tpu.dot_dimension_numbers<[1], [0], [0], [1], [0, 0, 1, 1], [], []>} : vector<6x75xbf16>, vector<75x512xbf16>, vector<6x512xf32> -> vector<6x512xf32>
    %10 = arith.maximumf %7, %9 : vector<6x512xf32>
    %11 = arith.maximumf %5, %10 : vector<6x512xf32>
    %c0_12 = arith.constant 0 : index
    %c0_13 = arith.constant 0 : index
    %12 = vector.load %arg2[%c0_12, %c0_13] : memref<6x1xf32, #tpu.memory_space<vmem>>, vector<6x1xf32>
    %13 = vector.broadcast %12 : vector<6x1xf32> to vector<6x512xf32>
    %14 = arith.addf %11, %13 : vector<6x512xf32>
    %cst_14 = arith.constant 0.000000e+00 : f32
    %15 = vector.broadcast %cst_14 : f32 to vector<6x512xf32>
    %16 = arith.maximumf %14, %15 : vector<6x512xf32>
    %c0_15 = arith.constant 0 : index
    %c0_16 = arith.constant 0 : index
    %17 = vector.load %arg7[%c0_15, %c0_16] : memref<6x512xf32, #tpu.memory_space<vmem>>, vector<6x512xf32>
    tpu.vector_store %arg7[%c0_15, %c0_16], %16 {strides = array<i32>} : memref<6x512xf32, #tpu.memory_space<vmem>>, vector<6x512xf32>,
    return
  }
  func.func @transform_0(%arg0: i32) -> (i32, i32) {
    %c0_i32 = arith.constant 0 : i32
    %c0_i32_0 = arith.constant 0 : i32
    %c0_i32_1 = arith.constant 0 : i32
    return %c0_i32, %c0_i32_0 : i32, i32
  }
  func.func @transform_1(%arg0: i32) -> (i32, i32) {
    %c0_i32 = arith.constant 0 : i32
    %c0_i32_0 = arith.constant 0 : i32
    %c0_i32_1 = arith.constant 0 : i32
    return %c0_i32, %c0_i32_0 : i32, i32
  }
  func.func @transform_2(%arg0: i32) -> (i32, i32) {
    %c0_i32 = arith.constant 0 : i32
    %c0_i32_0 = arith.constant 0 : i32
    return %c0_i32, %arg0 : i32, i32
  }
  func.func @transform_3(%arg0: i32) -> (i32, i32) {
    %c0_i32 = arith.constant 0 : i32
    %c0_i32_0 = arith.constant 0 : i32
    return %c0_i32, %arg0 : i32, i32
  }
  func.func @transform_4(%arg0: i32) -> (i32, i32) {
    %c0_i32 = arith.constant 0 : i32
    %c0_i32_0 = arith.constant 0 : i32
    return %c0_i32, %arg0 : i32, i32
  }
  func.func @transform_5(%arg0: i32) -> (i32, i32) {
    %c0_i32 = arith.constant 0 : i32
    %c0_i32_0 = arith.constant 0 : i32
    return %c0_i32, %arg0 : i32, i32
  }
  func.func @transform_6(%arg0: i32) -> (i32, i32) {
    %c0_i32 = arith.constant 0 : i32
    %c0_i32_0 = arith.constant 0 : i32
    return %c0_i32, %arg0 : i32, i32
  }
}

module attributes {stable_mosaic.version = 11 : i64} {
  func.func @_conv_relu_pool_kernel(%arg0: i32, %arg1: memref<16x150xbf16, #tpu.memory_space<vmem>>, %arg2: memref<16x1xf32, #tpu.memory_space<vmem>>, %arg3: memref<150x128xbf16, #tpu.memory_space<vmem>>, %arg4: memref<150x128xbf16, #tpu.memory_space<vmem>>, %arg5: memref<150x128xbf16, #tpu.memory_space<vmem>>, %arg6: memref<150x128xbf16, #tpu.memory_space<vmem>>, %arg7: memref<16x128xf32, #tpu.memory_space<vmem>>) attributes {dimension_semantics = [#tpu.dimension_semantics<parallel>], iteration_bounds = array<i64: 1>, scalar_prefetch = 0 : i64, scratch_operands = 0 : i64, tpu.core_type = #tpu.core_type<tc>, window_params = [{pipeline_mode = #tpu.pipeline_mode<synchronous>, transform_indices = @transform_0, window_bounds = array<i64: 16, 150>}, {pipeline_mode = #tpu.pipeline_mode<synchronous>, transform_indices = @transform_1, window_bounds = array<i64: 16, 1>}, {transform_indices = @transform_2, window_bounds = array<i64: 150, 128>}, {transform_indices = @transform_3, window_bounds = array<i64: 150, 128>}, {transform_indices = @transform_4, window_bounds = array<i64: 150, 128>}, {transform_indices = @transform_5, window_bounds = array<i64: 150, 128>}, {transform_indices = @transform_6, window_bounds = array<i64: 16, 128>}]} {
    %c0 = arith.constant 0 : index
    %c0_0 = arith.constant 0 : index
    %0 = vector.load %arg1[%c0, %c0_0] : memref<16x150xbf16, #tpu.memory_space<vmem>>, vector<16x150xbf16>
    %c0_1 = arith.constant 0 : index
    %c0_2 = arith.constant 0 : index
    %1 = vector.load %arg3[%c0_1, %c0_2] : memref<150x128xbf16, #tpu.memory_space<vmem>>, vector<150x128xbf16>
    %cst = arith.constant dense<0.000000e+00> : vector<16x128xf32>
    %2 = tpu.matmul %0, %1, %cst {dimension_numbers = #tpu.dot_dimension_numbers<[1], [0], [0], [1], [0, 0, 1, 1], [], []>} : vector<16x150xbf16>, vector<150x128xbf16>, vector<16x128xf32> -> vector<16x128xf32>
    %c0_3 = arith.constant 0 : index
    %c0_4 = arith.constant 0 : index
    %3 = vector.load %arg4[%c0_3, %c0_4] : memref<150x128xbf16, #tpu.memory_space<vmem>>, vector<150x128xbf16>
    %cst_5 = arith.constant dense<0.000000e+00> : vector<16x128xf32>
    %4 = tpu.matmul %0, %3, %cst_5 {dimension_numbers = #tpu.dot_dimension_numbers<[1], [0], [0], [1], [0, 0, 1, 1], [], []>} : vector<16x150xbf16>, vector<150x128xbf16>, vector<16x128xf32> -> vector<16x128xf32>
    %5 = arith.maximumf %2, %4 : vector<16x128xf32>
    %c0_6 = arith.constant 0 : index
    %c0_7 = arith.constant 0 : index
    %6 = vector.load %arg5[%c0_6, %c0_7] : memref<150x128xbf16, #tpu.memory_space<vmem>>, vector<150x128xbf16>
    %cst_8 = arith.constant dense<0.000000e+00> : vector<16x128xf32>
    %7 = tpu.matmul %0, %6, %cst_8 {dimension_numbers = #tpu.dot_dimension_numbers<[1], [0], [0], [1], [0, 0, 1, 1], [], []>} : vector<16x150xbf16>, vector<150x128xbf16>, vector<16x128xf32> -> vector<16x128xf32>
    %c0_9 = arith.constant 0 : index
    %c0_10 = arith.constant 0 : index
    %8 = vector.load %arg6[%c0_9, %c0_10] : memref<150x128xbf16, #tpu.memory_space<vmem>>, vector<150x128xbf16>
    %cst_11 = arith.constant dense<0.000000e+00> : vector<16x128xf32>
    %9 = tpu.matmul %0, %8, %cst_11 {dimension_numbers = #tpu.dot_dimension_numbers<[1], [0], [0], [1], [0, 0, 1, 1], [], []>} : vector<16x150xbf16>, vector<150x128xbf16>, vector<16x128xf32> -> vector<16x128xf32>
    %10 = arith.maximumf %7, %9 : vector<16x128xf32>
    %11 = arith.maximumf %5, %10 : vector<16x128xf32>
    %c0_12 = arith.constant 0 : index
    %c0_13 = arith.constant 0 : index
    %12 = vector.load %arg2[%c0_12, %c0_13] : memref<16x1xf32, #tpu.memory_space<vmem>>, vector<16x1xf32>
    %13 = vector.broadcast %12 : vector<16x1xf32> to vector<16x128xf32>
    %14 = arith.addf %11, %13 : vector<16x128xf32>
    %cst_14 = arith.constant 0.000000e+00 : f32
    %15 = vector.broadcast %cst_14 : f32 to vector<16x128xf32>
    %16 = arith.maximumf %14, %15 : vector<16x128xf32>
    %c0_15 = arith.constant 0 : index
    %c0_16 = arith.constant 0 : index
    %17 = vector.load %arg7[%c0_15, %c0_16] : memref<16x128xf32, #tpu.memory_space<vmem>>, vector<16x128xf32>
    tpu.vector_store %arg7[%c0_15, %c0_16], %16 {strides = array<i32>} : memref<16x128xf32, #tpu.memory_space<vmem>>, vector<16x128xf32>,
    return
  }
  func.func @transform_0(%arg0: i32) -> (i32, i32) {
    %c0_i32 = arith.constant 0 : i32
    %c0_i32_0 = arith.constant 0 : i32
    %c0_i32_1 = arith.constant 0 : i32
    return %c0_i32, %c0_i32_0 : i32, i32
  }
  func.func @transform_1(%arg0: i32) -> (i32, i32) {
    %c0_i32 = arith.constant 0 : i32
    %c0_i32_0 = arith.constant 0 : i32
    %c0_i32_1 = arith.constant 0 : i32
    return %c0_i32, %c0_i32_0 : i32, i32
  }
  func.func @transform_2(%arg0: i32) -> (i32, i32) {
    %c0_i32 = arith.constant 0 : i32
    %c0_i32_0 = arith.constant 0 : i32
    return %c0_i32, %arg0 : i32, i32
  }
  func.func @transform_3(%arg0: i32) -> (i32, i32) {
    %c0_i32 = arith.constant 0 : i32
    %c0_i32_0 = arith.constant 0 : i32
    return %c0_i32, %arg0 : i32, i32
  }
  func.func @transform_4(%arg0: i32) -> (i32, i32) {
    %c0_i32 = arith.constant 0 : i32
    %c0_i32_0 = arith.constant 0 : i32
    return %c0_i32, %arg0 : i32, i32
  }
  func.func @transform_5(%arg0: i32) -> (i32, i32) {
    %c0_i32 = arith.constant 0 : i32
    %c0_i32_0 = arith.constant 0 : i32
    return %c0_i32, %arg0 : i32, i32
  }
  func.func @transform_6(%arg0: i32) -> (i32, i32) {
    %c0_i32 = arith.constant 0 : i32
    %c0_i32_0 = arith.constant 0 : i32
    return %c0_i32, %arg0 : i32, i32
  }
}

module attributes {stable_mosaic.version = 11 : i64} {
  func.func @_fc_stack_kernel(%arg0: i32, %arg1: memref<8x400xbf16, #tpu.memory_space<vmem>>, %arg2: memref<400x120xbf16, #tpu.memory_space<vmem>>, %arg3: memref<1x120xf32, #tpu.memory_space<vmem>>, %arg4: memref<120x84xbf16, #tpu.memory_space<vmem>>, %arg5: memref<1x84xf32, #tpu.memory_space<vmem>>, %arg6: memref<84x10xbf16, #tpu.memory_space<vmem>>, %arg7: memref<1x10xf32, #tpu.memory_space<vmem>>, %arg8: memref<8x10xf32, #tpu.memory_space<vmem>>) attributes {dimension_semantics = [#tpu.dimension_semantics<parallel>], iteration_bounds = array<i64: 1>, scalar_prefetch = 0 : i64, scratch_operands = 0 : i64, tpu.core_type = #tpu.core_type<tc>, window_params = [{transform_indices = @transform_0, window_bounds = array<i64: 8, 400>}, {pipeline_mode = #tpu.pipeline_mode<synchronous>, transform_indices = @transform_1, window_bounds = array<i64: 400, 120>}, {pipeline_mode = #tpu.pipeline_mode<synchronous>, transform_indices = @transform_2, window_bounds = array<i64: 1, 120>}, {pipeline_mode = #tpu.pipeline_mode<synchronous>, transform_indices = @transform_3, window_bounds = array<i64: 120, 84>}, {pipeline_mode = #tpu.pipeline_mode<synchronous>, transform_indices = @transform_4, window_bounds = array<i64: 1, 84>}, {pipeline_mode = #tpu.pipeline_mode<synchronous>, transform_indices = @transform_5, window_bounds = array<i64: 84, 10>}, {pipeline_mode = #tpu.pipeline_mode<synchronous>, transform_indices = @transform_6, window_bounds = array<i64: 1, 10>}, {transform_indices = @transform_7, window_bounds = array<i64: 8, 10>}]} {
    %c0 = arith.constant 0 : index
    %c0_0 = arith.constant 0 : index
    %0 = vector.load %arg1[%c0, %c0_0] : memref<8x400xbf16, #tpu.memory_space<vmem>>, vector<8x400xbf16>
    %c0_1 = arith.constant 0 : index
    %c0_2 = arith.constant 0 : index
    %1 = vector.load %arg2[%c0_1, %c0_2] : memref<400x120xbf16, #tpu.memory_space<vmem>>, vector<400x120xbf16>
    %cst = arith.constant dense<0.000000e+00> : vector<8x120xf32>
    %2 = tpu.matmul %0, %1, %cst {dimension_numbers = #tpu.dot_dimension_numbers<[1], [0], [0], [1], [0, 0, 1, 1], [], []>} : vector<8x400xbf16>, vector<400x120xbf16>, vector<8x120xf32> -> vector<8x120xf32>
    %c0_3 = arith.constant 0 : index
    %c0_4 = arith.constant 0 : index
    %3 = vector.load %arg3[%c0_3, %c0_4] : memref<1x120xf32, #tpu.memory_space<vmem>>, vector<1x120xf32>
    %4 = vector.broadcast %3 : vector<1x120xf32> to vector<8x120xf32>
    %5 = arith.addf %2, %4 : vector<8x120xf32>
    %cst_5 = arith.constant 0.000000e+00 : f32
    %6 = vector.broadcast %cst_5 : f32 to vector<8x120xf32>
    %7 = arith.maximumf %5, %6 : vector<8x120xf32>
    %8 = arith.truncf %7 : vector<8x120xf32> to vector<8x120xbf16>
    %c0_6 = arith.constant 0 : index
    %c0_7 = arith.constant 0 : index
    %9 = vector.load %arg4[%c0_6, %c0_7] : memref<120x84xbf16, #tpu.memory_space<vmem>>, vector<120x84xbf16>
    %cst_8 = arith.constant dense<0.000000e+00> : vector<8x84xf32>
    %10 = tpu.matmul %8, %9, %cst_8 {dimension_numbers = #tpu.dot_dimension_numbers<[1], [0], [0], [1], [0, 0, 1, 1], [], []>} : vector<8x120xbf16>, vector<120x84xbf16>, vector<8x84xf32> -> vector<8x84xf32>
    %c0_9 = arith.constant 0 : index
    %c0_10 = arith.constant 0 : index
    %11 = vector.load %arg5[%c0_9, %c0_10] : memref<1x84xf32, #tpu.memory_space<vmem>>, vector<1x84xf32>
    %12 = vector.broadcast %11 : vector<1x84xf32> to vector<8x84xf32>
    %13 = arith.addf %10, %12 : vector<8x84xf32>
    %cst_11 = arith.constant 0.000000e+00 : f32
    %14 = vector.broadcast %cst_11 : f32 to vector<8x84xf32>
    %15 = arith.maximumf %13, %14 : vector<8x84xf32>
    %16 = arith.truncf %15 : vector<8x84xf32> to vector<8x84xbf16>
    %c0_12 = arith.constant 0 : index
    %c0_13 = arith.constant 0 : index
    %17 = vector.load %arg6[%c0_12, %c0_13] : memref<84x10xbf16, #tpu.memory_space<vmem>>, vector<84x10xbf16>
    %cst_14 = arith.constant dense<0.000000e+00> : vector<8x10xf32>
    %18 = tpu.matmul %16, %17, %cst_14 {dimension_numbers = #tpu.dot_dimension_numbers<[1], [0], [0], [1], [0, 0, 1, 1], [], []>} : vector<8x84xbf16>, vector<84x10xbf16>, vector<8x10xf32> -> vector<8x10xf32>
    %c0_15 = arith.constant 0 : index
    %c0_16 = arith.constant 0 : index
    %19 = vector.load %arg7[%c0_15, %c0_16] : memref<1x10xf32, #tpu.memory_space<vmem>>, vector<1x10xf32>
    %20 = vector.broadcast %19 : vector<1x10xf32> to vector<8x10xf32>
    %21 = arith.addf %18, %20 : vector<8x10xf32>
    %cst_17 = arith.constant dense<0xFF800000> : vector<8xf32>
    %22 = vector.multi_reduction <maximumf>, %21, %cst_17 [1] : vector<8x10xf32> to vector<8xf32>
    %23 = vector.shape_cast %22 : vector<8xf32> to vector<8x1xf32>
    %24 = vector.broadcast %23 : vector<8x1xf32> to vector<8x10xf32>
    %25 = arith.subf %21, %24 : vector<8x10xf32>
    %26 = math.exp %25 : vector<8x10xf32>
    %cst_18 = arith.constant dense<0.000000e+00> : vector<8xf32>
    %27 = vector.multi_reduction <add>, %26, %cst_18 [1] : vector<8x10xf32> to vector<8xf32>
    %28 = vector.shape_cast %27 : vector<8xf32> to vector<8x1xf32>
    %29 = tpu.reciprocal %28 {approx = true} : vector<8x1xf32> -> vector<8x1xf32>
    %30 = vector.broadcast %29 : vector<8x1xf32> to vector<8x10xf32>
    %31 = arith.mulf %26, %30 : vector<8x10xf32>
    %c0_19 = arith.constant 0 : index
    %c0_20 = arith.constant 0 : index
    %32 = vector.load %arg8[%c0_19, %c0_20] : memref<8x10xf32, #tpu.memory_space<vmem>>, vector<8x10xf32>
    tpu.vector_store %arg8[%c0_19, %c0_20], %31 {strides = array<i32>} : memref<8x10xf32, #tpu.memory_space<vmem>>, vector<8x10xf32>,
    return
  }
  func.func @transform_0(%arg0: i32) -> (i32, i32) {
    %c0_i32 = arith.constant 0 : i32
    %c0_i32_0 = arith.constant 0 : i32
    return %arg0, %c0_i32 : i32, i32
  }
  func.func @transform_1(%arg0: i32) -> (i32, i32) {
    %c0_i32 = arith.constant 0 : i32
    %c0_i32_0 = arith.constant 0 : i32
    %c0_i32_1 = arith.constant 0 : i32
    return %c0_i32, %c0_i32_0 : i32, i32
  }
  func.func @transform_2(%arg0: i32) -> (i32, i32) {
    %c0_i32 = arith.constant 0 : i32
    %c0_i32_0 = arith.constant 0 : i32
    %c0_i32_1 = arith.constant 0 : i32
    return %c0_i32, %c0_i32_0 : i32, i32
  }
  func.func @transform_3(%arg0: i32) -> (i32, i32) {
    %c0_i32 = arith.constant 0 : i32
    %c0_i32_0 = arith.constant 0 : i32
    %c0_i32_1 = arith.constant 0 : i32
    return %c0_i32, %c0_i32_0 : i32, i32
  }
  func.func @transform_4(%arg0: i32) -> (i32, i32) {
    %c0_i32 = arith.constant 0 : i32
    %c0_i32_0 = arith.constant 0 : i32
    %c0_i32_1 = arith.constant 0 : i32
    return %c0_i32, %c0_i32_0 : i32, i32
  }
  func.func @transform_5(%arg0: i32) -> (i32, i32) {
    %c0_i32 = arith.constant 0 : i32
    %c0_i32_0 = arith.constant 0 : i32
    %c0_i32_1 = arith.constant 0 : i32
    return %c0_i32, %c0_i32_0 : i32, i32
  }
  func.func @transform_6(%arg0: i32) -> (i32, i32) {
    %c0_i32 = arith.constant 0 : i32
    %c0_i32_0 = arith.constant 0 : i32
    %c0_i32_1 = arith.constant 0 : i32
    return %c0_i32, %c0_i32_0 : i32, i32
  }
  func.func @transform_7(%arg0: i32) -> (i32, i32) {
    %c0_i32 = arith.constant 0 : i32
    %c0_i32_0 = arith.constant 0 : i32
    return %arg0, %c0_i32 : i32, i32
  }
}

</mosaic_0001>

<bundles_post_ra>
// kernel: lenet5_forward.3
= control target key start
LH: loop header
LB: loop body
LE: loop exit
PB: predicated region body
PF: predicated region fallthrough
CT: control target
= control target key end

     0   :  { %v1118_v1 = vmov 0   ;;  %vm145_vm0 = vcmask 1044480   ;;  %vm146_vm1 = vcmask 1045504   ;;  %v1119_v10 = vmov 65535   ;;  %s1458_s2 = inlined_call_operand.vmem [shape: bf16[75,512], index: 2, kind: input, shape index: {}]   ;;  %s1459_s3 = inlined_call_operand.vmem [shape: bf16[75,512], index: 3, kind: input, shape index: {}]   ;;  %s1460_s0 = inlined_call_operand.vmem [shape: bf16[6,75], index: 0, kind: input, shape index: {}]   ;;  %s1461_s4 = inlined_call_operand.vmem [shape: bf16[75,512], index: 4, kind: input, shape index: {}]   ;;  %s1462_s5 = inlined_call_operand.vmem [shape: bf16[75,512], index: 5, kind: input, shape index: {}]   ;;  %s1463_s1 = inlined_call_operand.vmem [shape: f32[6,1], index: 1, kind: input, shape index: {}]   ;;  %s1464_s6 = inlined_call_operand.vmem [shape: f32[6,512], index: 6, kind: output, shape index: {}]  }
   0x1   :  { %v998_v0 = vld [vmem:[%s1458_s2 + $0x4] ss:$16 sps:$4 sm:$0xff]   ;;  %193 = vmatprep.mubr.bf16.mxu0 %v1118_v1  ;;  %234 = vmatprep.mubr.bf16.mxu1 %v1118_v1  ;;  %v1000_v2 = vld [vmem:[%s1458_s2 + $0xc] ss:$16 sps:$4 sm:$0xff]   ;;  %v1002_v3 = vld [vmem:[%s1458_s2] ss:$16 sps:$4 sm:$0xff]  }
   0x2   :  { %997 = vset.pattern.permute.xlu0 %v1118_v1  ;;  %161 = vmatprep.subr.bf16.mxu0 %v998_v0  ;;  %v1003_v4 = vld [vmem:[%s1458_s2 + $0x8] ss:$16 sps:$4 sm:$0xff]   ;;  %v1004_v5 = vld [vmem:[%s1458_s2 + $0x24] ss:$16 sps:$4 sm:$0xff]   ;;  %v1006_v6 = vld [vmem:[%s1458_s2 + $0x2c] ss:$16 sps:$4 sm:$0xff]  }
   0x3   :  { %202 = vmatprep.subr.bf16.mxu1 %v1000_v2  ;;  %162 = vmatpush1.bf16.msra.mxu0 %v1002_v3  ;;  %v1008_v7 = vld [vmem:[%s1458_s2 + $0x20] ss:$16 sps:$4 sm:$0xff]   ;;  %v1009_v8 = vld [vmem:[%s1458_s2 + $0x28] ss:$16 sps:$4 sm:$0xff]   ;;  %v1010_v9 = vld [vmem:[%s1458_s2 + $0x44] ss:$16 sps:$4 sm:$0xff]  }
   0x4   :  { %203 = vmatpush1.bf16.msra.mxu1 %v1003_v4  ;;  %163 = vmatprep.subr.bf16.mxu0 %v1004_v5  ;;  %v147_v11 = vsel %vm145_vm0, 4294967295, %v1119_v10  ;;  %v1012_v12 = vld [vmem:[%s1458_s2 + $0x4c] ss:$16 sps:$4 sm:$0xff]   ;;  %v1014_v13 = vld [vmem:[%s1458_s2 + $0x40] ss:$16 sps:$4 sm:$0xff]   ;;  %vm141_vm2 = vcmask 613376  }
   0x5   :  { %204 = vmatprep.subr.bf16.mxu1 %v1006_v6  ;;  %v1015_v14 = vld [vmem:[%s1458_s2 + $0x48] ss:$16 sps:$4 sm:$0xff]   ;;  %v1016_v15 = vld [vmem:[%s1458_s2 + $0x64] ss:$16 sps:$4 sm:$0xff]   ;;  %v1018_v16 = vld [vmem:[%s1458_s2 + $0x6c] ss:$16 sps:$4 sm:$0xff]  }
   0x6   :  { %v1020_v17 = vld [vmem:[%s1458_s2 + $0x60] ss:$16 sps:$4 sm:$0xff]   ;;  %v1021_v18 = vld [vmem:[%s1458_s2 + $0x68] ss:$16 sps:$4 sm:$0xff]   ;;  %v1206_v19 = vsel %vm146_vm1, %v147_v11, 0 }
   0x7   :  { %164 = vmatpush1.bf16.msra.mxu0 %v1008_v7  ;;  %v1022_v20 = vld [vmem:[%s1458_s2 + $0x84] ss:$16 sps:$4 sm:$0x3f]   ;;  %v1024_v21 = vld [vmem:[%s1458_s2 + $0x8c] ss:$16 sps:$4 sm:$0x3f]  }
   0x8   :  { %205 = vmatpush1.bf16.msra.mxu1 %v1009_v8  ;;  %165 = vmatprep.subr.bf16.mxu0 %v1010_v9  ;;  %v153_v22 = vand.u32 %v1022_v20, %v1206_v19  ;;  %v1026_v23 = vld [vmem:[%s1458_s2 + $0x80] ss:$16 sps:$4 sm:$0x3f]   ;;  %v1027_v24 = vld [vmem:[%s1458_s2 + $0x88] ss:$16 sps:$4 sm:$0x3f]   ;;  %v159_v25 = vand.u32 %v1024_v21, %v1206_v19 }
   0x9   :  { %206 = vmatprep.subr.bf16.mxu1 %v1012_v12  ;;  %v150_v26 = vand.u32 %v1026_v23, %v1206_v19  ;;  %v156_v27 = vand.u32 %v1027_v24, %v1206_v19  ;;  %v1030_v28 = vld [vmem:[%s1459_s3 + $0x4] ss:$16 sps:$4 sm:$0xff]   ;;  %v1033_v29 = vld [vmem:[%s1459_s3 + $0xc] ss:$16 sps:$4 sm:$0xff]   ;;  %v1233_v30 = vld [vmem:[%s1460_s0] sm:$0x7] }
   0xa   :  { %v1028_v31 = vld [vmem:[%s1459_s3] ss:$16 sps:$4 sm:$0xff]   ;;  %v1031_v32 = vld [vmem:[%s1459_s3 + $0x8] ss:$16 sps:$4 sm:$0xff]   ;;  %v1036_v33 = vld [vmem:[%s1459_s3 + $0x24] ss:$16 sps:$4 sm:$0xff]  }
   0xb   :  { %166 = vmatpush1.bf16.msra.mxu0 %v1014_v13  ;;  %v1039_v34 = vld [vmem:[%s1459_s3 + $0x2c] ss:$16 sps:$4 sm:$0xff]   ;;  %v1034_v35 = vld [vmem:[%s1459_s3 + $0x20] ss:$16 sps:$4 sm:$0xff]   ;;  %v1037_v36 = vld [vmem:[%s1459_s3 + $0x28] ss:$16 sps:$4 sm:$0xff]  }
   0xc   :  { %207 = vmatpush1.bf16.msra.mxu1 %v1015_v14  ;;  %167 = vmatprep.subr.bf16.mxu0 %v1016_v15  ;;  %v1042_v37 = vld [vmem:[%s1459_s3 + $0x44] ss:$16 sps:$4 sm:$0xff]   ;;  %v1045_v38 = vld [vmem:[%s1459_s3 + $0x4c] ss:$16 sps:$4 sm:$0xff]   ;;  %v1040_v39 = vld [vmem:[%s1459_s3 + $0x40] ss:$16 sps:$4 sm:$0xff]  }
   0xd   :  { %208 = vmatprep.subr.bf16.mxu1 %v1018_v16  ;;  %v1043_v40 = vld [vmem:[%s1459_s3 + $0x48] ss:$16 sps:$4 sm:$0xff]   ;;  %v1048_v41 = vld [vmem:[%s1459_s3 + $0x64] ss:$16 sps:$4 sm:$0xff]   ;;  %v1051_v42 = vld [vmem:[%s1459_s3 + $0x6c] ss:$16 sps:$4 sm:$0xff]  }
   0xe   :  { %v1054_v43 = vld [vmem:[%s1459_s3 + $0x84] ss:$16 sps:$4 sm:$0x3f]   ;;  %v1057_v44 = vld [vmem:[%s1459_s3 + $0x8c] ss:$16 sps:$4 sm:$0x3f]  }
   0xf   :  { %168 = vmatpush1.bf16.msra.mxu0 %v1020_v17  ;;  %v1046_v45 = vld [vmem:[%s1459_s3 + $0x60] ss:$16 sps:$4 sm:$0xff]   ;;  %v1049_v47 = vld [vmem:[%s1459_s3 + $0x68] ss:$16 sps:$4 sm:$0xff]   ;;  %v363_v49 = vand.u32 %v1054_v43, %v1206_v19  ;;  %v369_v50 = vand.u32 %v1057_v44, %v1206_v19  ;;  %v1060_v53 = vld [vmem:[%s1461_s4 + $0x4] ss:$16 sps:$4 sm:$0xff]  }
  0x10   :  { %209 = vmatpush1.bf16.msra.mxu1 %v1021_v18  ;;  %169 = vmatprep.subr.bf16.mxu0 %v153_v22  ;;  %v1052_v46 = vld [vmem:[%s1459_s3 + $0x80] ss:$16 sps:$4 sm:$0x3f]   ;;  %v1055_v48 = vld [vmem:[%s1459_s3 + $0x88] ss:$16 sps:$4 sm:$0x3f]  }
  0x11   :  { %210 = vmatprep.subr.bf16.mxu1 %v159_v25  ;;  %v360_v51 = vand.u32 %v1052_v46, %v1206_v19  ;;  %v366_v52 = vand.u32 %v1055_v48, %v1206_v19  ;;  %v1063_v54 = vld [vmem:[%s1461_s4 + $0xc] ss:$16 sps:$4 sm:$0xff]   ;;  %v1058_v55 = vld [vmem:[%s1461_s4] ss:$16 sps:$4 sm:$0xff]   ;;  %v1061_v56 = vld [vmem:[%s1461_s4 + $0x8] ss:$16 sps:$4 sm:$0xff]  }
  0x12   :  { %v1066_v57 = vld [vmem:[%s1461_s4 + $0x24] ss:$16 sps:$4 sm:$0xff]   ;;  %v1069_v58 = vld [vmem:[%s1461_s4 + $0x2c] ss:$16 sps:$4 sm:$0xff]   ;;  %v1064_v59 = vld [vmem:[%s1461_s4 + $0x20] ss:$16 sps:$4 sm:$0xff]  }
  0x13   :  { %170 = vmatpush1.bf16.msra.mxu0 %v150_v26  ;;  %v1067_v60 = vld [vmem:[%s1461_s4 + $0x28] ss:$16 sps:$4 sm:$0xff]   ;;  %v1072_v61 = vld [vmem:[%s1461_s4 + $0x44] ss:$16 sps:$4 sm:$0xff]   ;;  %v1075_v62 = vld [vmem:[%s1461_s4 + $0x4c] ss:$16 sps:$4 sm:$0xff]  }
  0x14   :  { %211 = vmatpush1.bf16.msra.mxu1 %v156_v27  ;;  %371 = vmatprep.subr.bf16.mxu0 %v1030_v28  ;;  %v1070_v63 = vld [vmem:[%s1461_s4 + $0x40] ss:$16 sps:$4 sm:$0xff]   ;;  %v1073_v0 = vld [vmem:[%s1461_s4 + $0x48] ss:$16 sps:$4 sm:$0xff]   ;;  %v1078_v2 = vld [vmem:[%s1461_s4 + $0x64] ss:$16 sps:$4 sm:$0xff]  }
  0x15   :  { %412 = vmatprep.subr.bf16.mxu1 %v1033_v29  ;;  %v1081_v3 = vld [vmem:[%s1461_s4 + $0x6c] ss:$16 sps:$4 sm:$0xff]   ;;  %v1084_v4 = vld [vmem:[%s1461_s4 + $0x84] ss:$16 sps:$4 sm:$0x3f]  }
  0x16   :  { %927 = vmatmul.mubr.msk.bf16.vlgmr.msra.gmra.mrb[0].mxu0 %vm141_vm2, %v1233_v30  ;;  %v1087_v5 = vld [vmem:[%s1461_s4 + $0x8c] ss:$16 sps:$4 sm:$0x3f]   ;;  %v1076_v6 = vld [vmem:[%s1461_s4 + $0x60] ss:$16 sps:$4 sm:$0xff]   ;;  %v577_v10 = vand.u32 %v1084_v4, %v1206_v19 }
  0x17   :  { %928 = vmatmul.mubr.msk.bf16.vlgmr.msra.gmra.mrb[0].mxu1 %vm141_vm2, %v1233_v30  ;;  %372 = vmatpush1.bf16.msra.mxu0 %v1028_v31  ;;  %v1079_v7 = vld [vmem:[%s1461_s4 + $0x68] ss:$16 sps:$4 sm:$0xff]   ;;  %v1082_v8 = vld [vmem:[%s1461_s4 + $0x80] ss:$16 sps:$4 sm:$0x3f]   ;;  %v583_v11 = vand.u32 %v1087_v5, %v1206_v19 }
  0x18   :  { %413 = vmatpush1.bf16.msra.mxu1 %v1031_v32  ;;  %373 = vmatprep.subr.bf16.mxu0 %v1036_v33  ;;  %v1085_v9 = vld [vmem:[%s1461_s4 + $0x88] ss:$16 sps:$4 sm:$0x3f]   ;;  %v885_v12 = vld [vmem:[%s1463_s1] sm:$0x3f]  ;;  %v574_v13 = vand.u32 %v1082_v8, %v1206_v19 }
  0x19   :  { %414 = vmatprep.subr.bf16.mxu1 %v1039_v34  ;;  %403 = vmatprep.mubr.bf16.mxu0 %v1118_v1  ;;  %v580_v14 = vand.u32 %v1085_v9, %v1206_v19  ;;  %v1090_v15 = vld [vmem:[%s1462_s5 + $0x4] ss:$16 sps:$4 sm:$0xff]   ;;  %v1093_v16 = vld [vmem:[%s1462_s5 + $0xc] ss:$16 sps:$4 sm:$0xff]   ;;  %v1088_v17 = vld [vmem:[%s1462_s5] ss:$16 sps:$4 sm:$0xff]  }
  0x1a   :  { %444 = vmatprep.mubr.bf16.mxu1 %v1118_v1  ;;  %888 = vperm.xlu0 %997, %v885_v12   ;;  %v1091_v18 = vld [vmem:[%s1462_s5 + $0x8] ss:$16 sps:$4 sm:$0xff]   ;;  %v1096_v20 = vld [vmem:[%s1462_s5 + $0x24] ss:$16 sps:$4 sm:$0xff]   ;;  %v1099_v21 = vld [vmem:[%s1462_s5 + $0x2c] ss:$16 sps:$4 sm:$0xff]  }
  0x1b   :  { %374 = vmatpush1.bf16.msra.mxu0 %v1034_v35  ;;  %v1094_v22 = vld [vmem:[%s1462_s5 + $0x20] ss:$16 sps:$4 sm:$0xff]   ;;  %v1097_v23 = vld [vmem:[%s1462_s5 + $0x28] ss:$16 sps:$4 sm:$0xff]   ;;  %v1102_v24 = vld [vmem:[%s1462_s5 + $0x44] ss:$16 sps:$4 sm:$0xff]  }
  0x1c   :  { %415 = vmatpush1.bf16.msra.mxu1 %v1037_v36  ;;  %375 = vmatprep.subr.bf16.mxu0 %v1042_v37  ;;  %v1105_v25 = vld [vmem:[%s1462_s5 + $0x4c] ss:$16 sps:$4 sm:$0xff]   ;;  %v1100_v26 = vld [vmem:[%s1462_s5 + $0x40] ss:$16 sps:$4 sm:$0xff]   ;;  %v1103_v27 = vld [vmem:[%s1462_s5 + $0x48] ss:$16 sps:$4 sm:$0xff]  }
  0x1d   :  { %416 = vmatprep.subr.bf16.mxu1 %v1045_v38  ;;  %v1108_v28 = vld [vmem:[%s1462_s5 + $0x64] ss:$16 sps:$4 sm:$0xff]   ;;  %v1111_v29 = vld [vmem:[%s1462_s5 + $0x6c] ss:$16 sps:$4 sm:$0xff]   ;;  %v1106_v32 = vld [vmem:[%s1462_s5 + $0x60] ss:$16 sps:$4 sm:$0xff]  }
  0x1e   :  { %v1117_v31 = vld [vmem:[%s1462_s5 + $0x8c] ss:$16 sps:$4 sm:$0x3f]   ;;  %v1109_v33 = vld [vmem:[%s1462_s5 + $0x68] ss:$16 sps:$4 sm:$0xff]  }
  0x1f   :  { %376 = vmatpush1.bf16.msra.mxu0 %v1040_v39  ;;  %v1112_v34 = vld [vmem:[%s1462_s5 + $0x80] ss:$16 sps:$4 sm:$0x3f]   ;;  %v1115_v35 = vld [vmem:[%s1462_s5 + $0x88] ss:$16 sps:$4 sm:$0x3f]   ;;  %v793_v37 = vand.u32 %v1117_v31, %v1206_v19 }
  0x20   :  { %417 = vmatpush1.bf16.msra.mxu1 %v1043_v40  ;;  %377 = vmatprep.subr.bf16.mxu0 %v1048_v41  ;;  %v784_v38 = vand.u32 %v1112_v34, %v1206_v19  ;;  %v790_v39 = vand.u32 %v1115_v35, %v1206_v19 }
  0x21   :  { %418 = vmatprep.subr.bf16.mxu1 %v1051_v42 }
  0x23   :  { %378 = vmatpush1.bf16.msra.mxu0 %v1046_v45 }
  0x24   :  { %419 = vmatpush1.bf16.msra.mxu1 %v1049_v47  ;;  %379 = vmatprep.subr.bf16.mxu0 %v363_v49 }
  0x25   :  { %420 = vmatprep.subr.bf16.mxu1 %v369_v50 }
  0x27   :  { %380 = vmatpush1.bf16.msra.mxu0 %v360_v51 }
  0x28   :  { %421 = vmatpush1.bf16.msra.mxu1 %v366_v52  ;;  %585 = vmatprep.subr.bf16.mxu0 %v1060_v53 }
  0x29   :  { %626 = vmatprep.subr.bf16.mxu1 %v1063_v54 }
  0x2a   :  { %949 = vmatmul.mubr.msk.bf16.vlgmr.msra.gmra.mrb[4].mxu0 %vm141_vm2, %v1233_v30 }
  0x2b   :  { %950 = vmatmul.mubr.msk.bf16.vlgmr.msra.gmra.mrb[4].mxu1 %vm141_vm2, %v1233_v30  ;;  %586 = vmatpush1.bf16.msra.mxu0 %v1058_v55 }
  0x2c   :  { %627 = vmatpush1.bf16.msra.mxu1 %v1061_v56  ;;  %587 = vmatprep.subr.bf16.mxu0 %v1066_v57 }
  0x2d   :  { %628 = vmatprep.subr.bf16.mxu1 %v1069_v58  ;;  %617 = vmatprep.mubr.bf16.mxu0 %v1118_v1 }
  0x2e   :  { %658 = vmatprep.mubr.bf16.mxu1 %v1118_v1 }
  0x2f   :  { %588 = vmatpush1.bf16.msra.mxu0 %v1064_v59 }
  0x30   :  { %629 = vmatpush1.bf16.msra.mxu1 %v1067_v60  ;;  %589 = vmatprep.subr.bf16.mxu0 %v1072_v61 }
  0x31   :  { %630 = vmatprep.subr.bf16.mxu1 %v1075_v62 }
  0x33   :  { %590 = vmatpush1.bf16.msra.mxu0 %v1070_v63 }
  0x34   :  { %631 = vmatpush1.bf16.msra.mxu1 %v1073_v0  ;;  %591 = vmatprep.subr.bf16.mxu0 %v1078_v2 }
  0x35   :  { %632 = vmatprep.subr.bf16.mxu1 %v1081_v3 }
  0x37   :  { %592 = vmatpush1.bf16.msra.mxu0 %v1076_v6 }
  0x38   :  { %633 = vmatpush1.bf16.msra.mxu1 %v1079_v7  ;;  %593 = vmatprep.subr.bf16.mxu0 %v577_v10 }
  0x39   :  { %634 = vmatprep.subr.bf16.mxu1 %v583_v11 }
  0x3b   :  { %594 = vmatpush1.bf16.msra.mxu0 %v574_v13 }
  0x3c   :  { %635 = vmatpush1.bf16.msra.mxu1 %v580_v14  ;;  %795 = vmatprep.subr.bf16.mxu0 %v1090_v15 }
  0x3d   :  { %836 = vmatprep.subr.bf16.mxu1 %v1093_v16 }
  0x3e   :  { %971 = vmatmul.mubr.msk.bf16.vlgmr.msra.gmra.mrb[8].mxu0 %vm141_vm2, %v1233_v30 }
  0x3f   :  { %972 = vmatmul.mubr.msk.bf16.vlgmr.msra.gmra.mrb[8].mxu1 %vm141_vm2, %v1233_v30  ;;  %796 = vmatpush1.bf16.msra.mxu0 %v1088_v17 }
  0x40   :  { %837 = vmatpush1.bf16.msra.mxu1 %v1091_v18  ;;  %797 = vmatprep.subr.bf16.mxu0 %v1096_v20 }
  0x41   :  { %838 = vmatprep.subr.bf16.mxu1 %v1099_v21  ;;  %827 = vmatprep.mubr.bf16.mxu0 %v1118_v1 }
  0x42   :  { %868 = vmatprep.mubr.bf16.mxu1 %v1118_v1  ;;  %v1114_v1 = vld [vmem:[%s1462_s5 + $0x84] ss:$16 sps:$4 sm:$0x3f]  }
  0x43   :  { %798 = vmatpush1.bf16.msra.mxu0 %v1094_v22  ;;  %v787_v36 = vand.u32 %v1114_v1, %v1206_v19 }
  0x44   :  { %839 = vmatpush1.bf16.msra.mxu1 %v1097_v23  ;;  %799 = vmatprep.subr.bf16.mxu0 %v1102_v24 }
  0x45   :  { %840 = vmatprep.subr.bf16.mxu1 %v1105_v25 }
  0x47   :  { %800 = vmatpush1.bf16.msra.mxu0 %v1100_v26 }
  0x48   :  { %841 = vmatpush1.bf16.msra.mxu1 %v1103_v27  ;;  %801 = vmatprep.subr.bf16.mxu0 %v1108_v28 }
  0x49   :  { %842 = vmatprep.subr.bf16.mxu1 %v1111_v29 }
  0x4b   :  { %802 = vmatpush1.bf16.msra.mxu0 %v1106_v32 }
  0x4c   :  { %843 = vmatpush1.bf16.msra.mxu1 %v1109_v33  ;;  %803 = vmatprep.subr.bf16.mxu0 %v787_v36 }
  0x4d   :  { %844 = vmatprep.subr.bf16.mxu1 %v793_v37 }
  0x4f   :  { %804 = vmatpush1.bf16.msra.mxu0 %v784_v38 }
  0x50   :  { %845 = vmatpush1.bf16.msra.mxu1 %v790_v39 }
  0x52   :  { %993 = vmatmul.mubr.msk.bf16.vlgmr.msra.gmra.mrb[12].mxu0 %vm141_vm2, %v1233_v30 }
  0x53   :  { %994 = vmatmul.mubr.msk.bf16.vlgmr.msra.gmra.mrb[12].mxu1 %vm141_vm2, %v1233_v30 }
  0x99   :  { %v889_v3 = vpop.permute.xlu0 %888 }
  0xe9   :  { %v195_v40 = vpop.f32.mrb[0].mxu0 }
  0xea   :  { %v236_v41 = vpop.f32.mrb[0].mxu1  ;;  %v197_v42 = vpop.f32.mrb[1].mxu0 }
  0xeb   :  { %v238_v43 = vpop.f32.mrb[1].mxu1  ;;  %v199_v44 = vpop.f32.mrb[2].mxu0 }
  0xec   :  { %v240_v45 = vpop.f32.mrb[2].mxu1  ;;  %v200_v46 = vpop.f32.mrb[3].mxu0 }
  0xed   :  { %v241_v47 = vpop.f32.mrb[3].mxu1 }
  0xfd   :  { %v405_v48 = vpop.f32.mrb[4].mxu0 }
  0xfe   :  { %v446_v19 = vpop.f32.mrb[4].mxu1  ;;  %v453_v49 = vmax.f32 %v195_v40, %v405_v48  ;;  %v407_v51 = vpop.f32.mrb[5].mxu0 }
  0xff   :  { %v455_v50 = vmax.f32 %v236_v41, %v446_v19  ;;  %v448_v52 = vpop.f32.mrb[5].mxu1  ;;  %v454_v53 = vmax.f32 %v197_v42, %v407_v51  ;;  %v409_v55 = vpop.f32.mrb[6].mxu0 }
 0x100   :  { %v456_v54 = vmax.f32 %v238_v43, %v448_v52  ;;  %v450_v56 = vpop.f32.mrb[6].mxu1  ;;  %v410_v57 = vpop.f32.mrb[7].mxu0 }
 0x101   :  { %v451_v30 = vpop.f32.mrb[7].mxu1 }
 0x111   :  { %v619_v58 = vpop.f32.mrb[8].mxu0 }
 0x112   :  { %v660_v59 = vpop.f32.mrb[8].mxu1  ;;  %v621_v60 = vpop.f32.mrb[9].mxu0 }
 0x113   :  { %v662_v61 = vpop.f32.mrb[9].mxu1  ;;  %v623_v62 = vpop.f32.mrb[10].mxu0 }
 0x114   :  { %v664_v63 = vpop.f32.mrb[10].mxu1  ;;  %v624_v0 = vpop.f32.mrb[11].mxu0 }
 0x115   :  { %v665_v2 = vpop.f32.mrb[11].mxu1 }
 0x125   :  { %v829_v4 = vpop.f32.mrb[12].mxu0 }
 0x126   :  { %v870_v5 = vpop.f32.mrb[12].mxu1  ;;  %v877_v6 = vmax.f32 %v619_v58, %v829_v4  ;;  %v831_v8 = vpop.f32.mrb[13].mxu0 }
 0x127   :  { %v879_v7 = vmax.f32 %v660_v59, %v870_v5  ;;  %v872_v9 = vpop.f32.mrb[13].mxu1  ;;  %v878_v10 = vmax.f32 %v621_v60, %v831_v8  ;;  %v833_v12 = vpop.f32.mrb[14].mxu0 }
 0x128   :  { %v880_v11 = vmax.f32 %v662_v61, %v872_v9  ;;  %v874_v13 = vpop.f32.mrb[14].mxu1  ;;  %v881_v14 = vmax.f32 %v453_v49, %v877_v6  ;;  %v834_v16 = vpop.f32.mrb[15].mxu0 }
 0x129   :  { %v883_v15 = vmax.f32 %v455_v50, %v879_v7  ;;  %v875_v17 = vpop.f32.mrb[15].mxu1  ;;  %v882_v18 = vmax.f32 %v454_v53, %v878_v10 }
 0x12a   :  { %v884_v20 = vmax.f32 %v456_v54, %v880_v11  ;;  %v891_v21 = vadd.f32 %v889_v3, %v881_v14 }
 0x12b   :  { %v893_v22 = vadd.f32 %v889_v3, %v883_v15  ;;  %v892_v23 = vadd.f32 %v889_v3, %v882_v18 }
 0x12c   :  { %v894_v24 = vadd.f32 %v889_v3, %v884_v20  ;;  %v895_v25 = vmax.f32 %v891_v21, 0.0 }
 0x12d   :  { %v897_v26 = vmax.f32 %v893_v22, 0.0  ;;  %v896_v27 = vmax.f32 %v892_v23, 0.0 }
 0x12e   :  { %v898_v28 = vmax.f32 %v894_v24, 0.0  ;;  %899 = vst [vmem:[%s1464_s6] sm:$0x3f] %v895_v25 }
 0x12f   :  { %901 = vst [vmem:[%s1464_s6 + $0x10] sm:$0x3f] %v897_v26  ;;  %900 = vst [vmem:[%s1464_s6 + $0x8] sm:$0x3f] %v896_v27 }
 0x130   :  { %902 = vst [vmem:[%s1464_s6 + $0x18] sm:$0x3f] %v898_v28 }

// kernel: lenet5_forward.4
= control target key start
LH: loop header
LB: loop body
LE: loop exit
PB: predicated region body
PF: predicated region fallthrough
CT: control target
= control target key end

     0   :  { %v639_v0 = vmov 0   ;;  %vm111_vm0 = vcmask 179200   ;;  %vm115_vm1 = vcmask 1042432   ;;  %s868_s2 = inlined_call_operand.vmem [shape: bf16[150,128], index: 2, kind: input, shape index: {}]   ;;  %s869_s3 = inlined_call_operand.vmem [shape: bf16[150,128], index: 3, kind: input, shape index: {}]   ;;  %s870_s0 = inlined_call_operand.vmem [shape: bf16[16,150], index: 0, kind: input, shape index: {}]   ;;  %s871_s4 = inlined_call_operand.vmem [shape: bf16[150,128], index: 4, kind: input, shape index: {}]   ;;  %s872_s5 = inlined_call_operand.vmem [shape: bf16[150,128], index: 5, kind: input, shape index: {}]   ;;  %s873_s1 = inlined_call_operand.vmem [shape: f32[16,1], index: 1, kind: input, shape index: {}]   ;;  %s874_s6 = inlined_call_operand.vmem [shape: f32[16,128], index: 6, kind: output, shape index: {}]  }
   0x1   :  { %119 = vmatprep.subr.bf16.mxu0 %v639_v0  ;;  %239 = vmatprep.subr.bf16.mxu1 %v639_v0  ;;  %v596_v1 = vld [vmem:[%s868_s2] sm:$0xff]   ;;  %v598_v3 = vld [vmem:[%s868_s2 + $0x8] sm:$0xff]   ;;  %v600_v5 = vld [vmem:[%s868_s2 + $0x10] sm:$0xff]  }
   0x2   :  { %v597_v2 = vld [vmem:[%s869_s3] sm:$0xff]   ;;  %595 = vset.pattern.permute.xlu0 %v639_v0  ;;  %120 = vmatpush1.bf16.msra.mxu0 %v596_v1  ;;  %v599_v4 = vld [vmem:[%s869_s3 + $0x8] sm:$0xff]   ;;  %v601_v6 = vld [vmem:[%s869_s3 + $0x10] sm:$0xff]  }
   0x3   :  { %240 = vmatpush1.bf16.msra.mxu1 %v597_v2  ;;  %121 = vmatprep.subr.bf16.mxu0 %v639_v0  ;;  %v602_v7 = vld [vmem:[%s868_s2 + $0x18] sm:$0xff]   ;;  %v604_v9 = vld [vmem:[%s868_s2 + $0x20] sm:$0xff]   ;;  %v606_v11 = vld [vmem:[%s868_s2 + $0x28] sm:$0xff]  }
   0x4   :  { %241 = vmatprep.subr.bf16.mxu1 %v639_v0  ;;  %v603_v8 = vld [vmem:[%s869_s3 + $0x18] sm:$0xff]   ;;  %v605_v10 = vld [vmem:[%s869_s3 + $0x20] sm:$0xff]   ;;  %v607_v12 = vld [vmem:[%s869_s3 + $0x28] sm:$0xff]  }
   0x5   :  { %v616_v13 = vld [vmem:[%s870_s0 + $0x4] ss:$8 sps:$4 sm:$0xff]   ;;  %v608_v14 = vld [vmem:[%s868_s2 + $0x30] sm:$0xff]   ;;  %v610_v16 = vld [vmem:[%s868_s2 + $0x38] sm:$0xff]  }
   0x6   :  { %122 = vmatpush1.bf16.msra.mxu0 %v598_v3  ;;  %560 = vmatprep.mubr.msk.bf16.mxu0 %vm111_vm0, %v616_v13  ;;  %v609_v15 = vld [vmem:[%s869_s3 + $0x30] sm:$0xff]   ;;  %v611_v17 = vld [vmem:[%s869_s3 + $0x38] sm:$0xff]   ;;  %v614_v18 = vld [vmem:[%s868_s2 + $0x48] ss:$0 sps:$4 sm:$0x77]  }
   0x7   :  { %242 = vmatpush1.bf16.msra.mxu1 %v599_v4  ;;  %123 = vmatprep.subr.bf16.mxu0 %v639_v0  ;;  %v612_v19 = vld [vmem:[%s868_s2 + $0x40] sm:$0xff]   ;;  %v615_v20 = vld [vmem:[%s869_s3 + $0x48] ss:$0 sps:$4 sm:$0x77]   ;;  %v117_v22 = vsel %vm115_vm1, %v614_v18, 0  ;;  %v623_v31 = vld [vmem:[%s871_s4 + $0x10] sm:$0xff]  }
   0x8   :  { %243 = vmatprep.subr.bf16.mxu1 %v639_v0  ;;  %571 = vmatprep.mubr.msk.bf16.mxu1 %vm111_vm0, %v616_v13  ;;  %v613_v21 = vld [vmem:[%s869_s3 + $0x40] sm:$0xff]   ;;  %v237_v23 = vsel %vm115_vm1, %v615_v20, 0  ;;  %v621_v28 = vld [vmem:[%s871_s4 + $0x8] sm:$0xff]   ;;  %v624_v32 = vld [vmem:[%s872_s5 + $0x10] sm:$0xff]  }
   0x9   :  { %v766_v24 = vld [vmem:[%s870_s0] ss:$8 sps:$4 sm:$0xff]   ;;  %v625_v33 = vld [vmem:[%s871_s4 + $0x18] sm:$0xff]   ;;  %v631_v39 = vld [vmem:[%s871_s4 + $0x30] sm:$0xff]  }
   0xa   :  { %124 = vmatpush1.bf16.msra.mxu0 %v600_v5  ;;  %v619_v25 = vld [vmem:[%s871_s4] sm:$0xff]   ;;  %v527_v29 = vld [vmem:[%s873_s1 + $0x8] sm:$0xff]  ;;  %v626_v34 = vld [vmem:[%s872_s5 + $0x18] sm:$0xff]  }
   0xb   :  { %244 = vmatpush1.bf16.msra.mxu1 %v601_v6  ;;  %125 = vmatprep.subr.bf16.mxu0 %v639_v0  ;;  %v620_v26 = vld [vmem:[%s872_s5] sm:$0xff]   ;;  %v622_v30 = vld [vmem:[%s872_s5 + $0x8] sm:$0xff]   ;;  %v632_v40 = vld [vmem:[%s872_s5 + $0x30] sm:$0xff]  }
   0xc   :  { %245 = vmatprep.subr.bf16.mxu1 %v639_v0  ;;  %v526_v27 = vld [vmem:[%s873_s1] sm:$0xff]  ;;  %v629_v37 = vld [vmem:[%s871_s4 + $0x28] sm:$0xff]   ;;  %v633_v41 = vld [vmem:[%s871_s4 + $0x38] sm:$0xff]  }
   0xd   :  { %530 = vperm.xlu0 %595, %v526_v27   ;;  %v627_v35 = vld [vmem:[%s871_s4 + $0x20] sm:$0xff]   ;;  %v630_v38 = vld [vmem:[%s872_s5 + $0x28] sm:$0xff]   ;;  %v634_v42 = vld [vmem:[%s872_s5 + $0x38] sm:$0xff]  }
   0xe   :  { %126 = vmatpush1.bf16.msra.mxu0 %v602_v7  ;;  %v628_v36 = vld [vmem:[%s872_s5 + $0x20] sm:$0xff]   ;;  %v637_v45 = vld [vmem:[%s871_s4 + $0x48] ss:$0 sps:$4 sm:$0x77]  }
   0xf   :  { %246 = vmatpush1.bf16.msra.mxu1 %v603_v8  ;;  %127 = vmatprep.subr.bf16.mxu0 %v639_v0  ;;  %v635_v43 = vld [vmem:[%s871_s4 + $0x40] sm:$0xff]   ;;  %v638_v46 = vld [vmem:[%s872_s5 + $0x48] ss:$0 sps:$4 sm:$0x77]   ;;  %v359_v47 = vsel %vm115_vm1, %v637_v45, 0 }
  0x10   :  { %247 = vmatprep.subr.bf16.mxu1 %v639_v0  ;;  %v636_v44 = vld [vmem:[%s872_s5 + $0x40] sm:$0xff]   ;;  %v479_v48 = vsel %vm115_vm1, %v638_v46, 0 }
  0x11   :  { %535 = vperm.xlu0 %595, %v527_v29  }
  0x12   :  { %128 = vmatpush1.bf16.msra.mxu0 %v604_v9 }
  0x13   :  { %248 = vmatpush1.bf16.msra.mxu1 %v605_v10  ;;  %129 = vmatprep.subr.bf16.mxu0 %v639_v0 }
  0x14   :  { %249 = vmatprep.subr.bf16.mxu1 %v639_v0 }
  0x16   :  { %130 = vmatpush1.bf16.msra.mxu0 %v606_v11 }
  0x17   :  { %250 = vmatpush1.bf16.msra.mxu1 %v607_v12  ;;  %131 = vmatprep.subr.bf16.mxu0 %v639_v0 }
  0x18   :  { %251 = vmatprep.subr.bf16.mxu1 %v639_v0 }
  0x1a   :  { %132 = vmatpush1.bf16.msra.mxu0 %v608_v14 }
  0x1b   :  { %252 = vmatpush1.bf16.msra.mxu1 %v609_v15  ;;  %133 = vmatprep.subr.bf16.mxu0 %v639_v0 }
  0x1c   :  { %253 = vmatprep.subr.bf16.mxu1 %v639_v0 }
  0x1e   :  { %134 = vmatpush1.bf16.msra.mxu0 %v610_v16 }
  0x1f   :  { %254 = vmatpush1.bf16.msra.mxu1 %v611_v17  ;;  %135 = vmatprep.subr.bf16.mxu0 %v639_v0 }
  0x20   :  { %255 = vmatprep.subr.bf16.mxu1 %v639_v0 }
  0x22   :  { %136 = vmatpush1.bf16.msra.mxu0 %v612_v19 }
  0x23   :  { %256 = vmatpush1.bf16.msra.mxu1 %v613_v21  ;;  %137 = vmatprep.subr.bf16.mxu0 %v639_v0 }
  0x24   :  { %257 = vmatprep.subr.bf16.mxu1 %v639_v0 }
  0x26   :  { %138 = vmatpush1.bf16.msra.mxu0 %v117_v22 }
  0x27   :  { %258 = vmatpush1.bf16.msra.mxu1 %v237_v23  ;;  %361 = vmatprep.subr.bf16.mxu0 %v639_v0 }
  0x28   :  { %481 = vmatprep.subr.bf16.mxu1 %v639_v0 }
  0x29   :  { %152 = vmatmul.mubr.bf16.vlgmr.msra.gmra.mrb[0].mxu0 %v766_v24 }
  0x2a   :  { %272 = vmatmul.mubr.bf16.vlgmr.msra.gmra.mrb[0].mxu1 %v766_v24  ;;  %362 = vmatpush1.bf16.msra.mxu0 %v619_v25 }
  0x2b   :  { %482 = vmatpush1.bf16.msra.mxu1 %v620_v26  ;;  %363 = vmatprep.subr.bf16.mxu0 %v639_v0 }
  0x2c   :  { %483 = vmatprep.subr.bf16.mxu1 %v639_v0  ;;  %582 = vmatprep.mubr.msk.bf16.mxu0 %vm111_vm0, %v616_v13 }
  0x2d   :  { %593 = vmatprep.mubr.msk.bf16.mxu1 %vm111_vm0, %v616_v13 }
  0x2e   :  { %364 = vmatpush1.bf16.msra.mxu0 %v621_v28 }
  0x2f   :  { %484 = vmatpush1.bf16.msra.mxu1 %v622_v30  ;;  %365 = vmatprep.subr.bf16.mxu0 %v639_v0 }
  0x30   :  { %485 = vmatprep.subr.bf16.mxu1 %v639_v0 }
  0x32   :  { %366 = vmatpush1.bf16.msra.mxu0 %v623_v31 }
  0x33   :  { %486 = vmatpush1.bf16.msra.mxu1 %v624_v32  ;;  %367 = vmatprep.subr.bf16.mxu0 %v639_v0 }
  0x34   :  { %487 = vmatprep.subr.bf16.mxu1 %v639_v0 }
  0x36   :  { %368 = vmatpush1.bf16.msra.mxu0 %v625_v33 }
  0x37   :  { %488 = vmatpush1.bf16.msra.mxu1 %v626_v34  ;;  %369 = vmatprep.subr.bf16.mxu0 %v639_v0 }
  0x38   :  { %489 = vmatprep.subr.bf16.mxu1 %v639_v0 }
  0x3a   :  { %370 = vmatpush1.bf16.msra.mxu0 %v627_v35 }
  0x3b   :  { %490 = vmatpush1.bf16.msra.mxu1 %v628_v36  ;;  %371 = vmatprep.subr.bf16.mxu0 %v639_v0 }
  0x3c   :  { %491 = vmatprep.subr.bf16.mxu1 %v639_v0 }
  0x3e   :  { %372 = vmatpush1.bf16.msra.mxu0 %v629_v37 }
  0x3f   :  { %492 = vmatpush1.bf16.msra.mxu1 %v630_v38  ;;  %373 = vmatprep.subr.bf16.mxu0 %v639_v0 }
  0x40   :  { %493 = vmatprep.subr.bf16.mxu1 %v639_v0 }
  0x42   :  { %374 = vmatpush1.bf16.msra.mxu0 %v631_v39 }
  0x43   :  { %494 = vmatpush1.bf16.msra.mxu1 %v632_v40  ;;  %375 = vmatprep.subr.bf16.mxu0 %v639_v0 }
  0x44   :  { %495 = vmatprep.subr.bf16.mxu1 %v639_v0 }
  0x46   :  { %376 = vmatpush1.bf16.msra.mxu0 %v633_v41 }
  0x47   :  { %496 = vmatpush1.bf16.msra.mxu1 %v634_v42  ;;  %377 = vmatprep.subr.bf16.mxu0 %v639_v0 }
  0x48   :  { %497 = vmatprep.subr.bf16.mxu1 %v639_v0 }
  0x4a   :  { %378 = vmatpush1.bf16.msra.mxu0 %v635_v43 }
  0x4b   :  { %498 = vmatpush1.bf16.msra.mxu1 %v636_v44  ;;  %379 = vmatprep.subr.bf16.mxu0 %v639_v0 }
  0x4c   :  { %499 = vmatprep.subr.bf16.mxu1 %v639_v0 }
  0x4e   :  { %380 = vmatpush1.bf16.msra.mxu0 %v359_v47 }
  0x4f   :  { %500 = vmatpush1.bf16.msra.mxu1 %v479_v48 }
  0x51   :  { %394 = vmatmul.mubr.bf16.vlgmr.msra.gmra.mrb[4].mxu0 %v766_v24 }
  0x52   :  { %514 = vmatmul.mubr.bf16.vlgmr.msra.gmra.mrb[4].mxu1 %v766_v24 }
  0x8c   :  { %v531_v59 = vpop.permute.xlu0 %530 }
  0x90   :  { %v536_v9 = vpop.permute.xlu0 %535 }
  0xfc   :  { %v153_v49 = vpop.f32.mrb[0].mxu0 }
  0xfd   :  { %v273_v50 = vpop.f32.mrb[0].mxu1  ;;  %v155_v51 = vpop.f32.mrb[1].mxu0 }
  0xfe   :  { %v280_v52 = vmax.f32 %v153_v49, %v273_v50  ;;  %v275_v53 = vpop.f32.mrb[1].mxu1  ;;  %v156_v54 = vpop.f32.mrb[2].mxu0 }
  0xff   :  { %v276_v55 = vpop.f32.mrb[2].mxu1  ;;  %v158_v56 = vpop.f32.mrb[3].mxu0 }
 0x100   :  { %v281_v57 = vmax.f32 %v156_v54, %v276_v55  ;;  %v278_v58 = vpop.f32.mrb[3].mxu1 }
 0x124   :  { %v395_v60 = vpop.f32.mrb[4].mxu0 }
 0x125   :  { %v515_v61 = vpop.f32.mrb[4].mxu1  ;;  %v397_v62 = vpop.f32.mrb[5].mxu0 }
 0x126   :  { %v522_v63 = vmax.f32 %v395_v60, %v515_v61  ;;  %v517_v0 = vpop.f32.mrb[5].mxu1  ;;  %v398_v1 = vpop.f32.mrb[6].mxu0 }
 0x127   :  { %v518_v2 = vpop.f32.mrb[6].mxu1  ;;  %v400_v3 = vpop.f32.mrb[7].mxu0 }
 0x128   :  { %v524_v4 = vmax.f32 %v280_v52, %v522_v63  ;;  %v523_v5 = vmax.f32 %v398_v1, %v518_v2  ;;  %v520_v6 = vpop.f32.mrb[7].mxu1 }
 0x12a   :  { %v538_v7 = vadd.f32 %v531_v59, %v524_v4  ;;  %v525_v8 = vmax.f32 %v281_v57, %v523_v5 }
 0x12c   :  { %v540_v10 = vmax.f32 %v538_v7, 0.0  ;;  %v539_v11 = vadd.f32 %v536_v9, %v525_v8 }
 0x12e   :  { %542 = vst [vmem:[%s874_s6] sm:$0xff] %v540_v10  ;;  %v541_v12 = vmax.f32 %v539_v11, 0.0 }
 0x130   :  { %543 = vst [vmem:[%s874_s6 + $0x8] sm:$0xff] %v541_v12 }

// kernel: lenet5_forward.5
= control target key start
LH: loop header
LB: loop body
LE: loop exit
PB: predicated region body
PF: predicated region fallthrough
CT: control target
= control target key end

     0   :  { %v741_v0 = vmov 0   ;;  %vm249_vm0 = vcmask 130048   ;;  %v742_v32 = vmov 0.0   ;;  %vm406_vm1 = vcmask 1043456   ;;  %s947_s1 = inlined_call_operand.vmem [shape: bf16[400,120], index: 1, kind: input, shape index: {}]   ;;  %s948_s0 = inlined_call_operand.vmem [shape: bf16[8,400], index: 0, kind: input, shape index: {}]   ;;  %s949_s3 = inlined_call_operand.vmem [shape: bf16[120,84], index: 3, kind: input, shape index: {}]   ;;  %s950_s5 = inlined_call_operand.vmem [shape: bf16[84,10], index: 5, kind: input, shape index: {}]   ;;  %s951_s2 = inlined_call_operand.vmem [shape: f32[1,120], index: 2, kind: input, shape index: {}]   ;;  %s952_s4 = inlined_call_operand.vmem [shape: f32[1,84], index: 4, kind: input, shape index: {}]   ;;  %s953_s6 = inlined_call_operand.vmem [shape: f32[1,10], index: 6, kind: input, shape index: {}]   ;;  %s954_s7 = inlined_call_operand.vmem [shape: f32[8,10], index: 7, kind: output, shape index: {}]  }
   0x1   :  { %293 = vmatprep.subr.bf16.mxu1 %v741_v0  ;;  %v694_v1 = vld [vmem:[%s947_s1 + $0x40] sm:$0xff]   ;;  %v697_v4 = vld [vmem:[%s947_s1 + $0x48] sm:$0xff]   ;;  %v700_v7 = vld [vmem:[%s947_s1 + $0x50] sm:$0xff]   ;;  %vm743_vm2 = vmmov 0   ;;  %vm402_vm3 = vcmask 982016   ;;  %vm507_vm4 = vcmask 1041408  }
   0x2   :  { %v695_v2 = vld [vmem:[%s947_s1 + $0x80] sm:$0xff]   ;;  %617 = vmatprep.subr.bf16.mxu0 %v694_v1  ;;  %v698_v5 = vld [vmem:[%s947_s1 + $0x88] sm:$0xff]   ;;  %v701_v8 = vld [vmem:[%s947_s1 + $0x90] sm:$0xff]   ;;  %vm503_vm5 = vcmask 687104   ;;  %vm551_vm6 = vcmask 80896  }
   0x3   :  { %v696_v3 = vld [vmem:[%s947_s1] sm:$0xff]   ;;  %294 = vmatpush1.bf16.msra.mxu1 %v695_v2  ;;  %v699_v6 = vld [vmem:[%s947_s1 + $0x8] sm:$0xff]   ;;  %v702_v9 = vld [vmem:[%s947_s1 + $0x10] sm:$0xff]  }
   0x4   :  { %618 = vmatpush3.bf16.msra.mxu0 %v696_v3  ;;  %295 = vmatprep.subr.bf16.mxu1 %v741_v0  ;;  %v703_v10 = vld [vmem:[%s947_s1 + $0x58] sm:$0xff]   ;;  %v706_v13 = vld [vmem:[%s947_s1 + $0x60] sm:$0xff]   ;;  %v709_v16 = vld [vmem:[%s947_s1 + $0x68] sm:$0xff]  }
   0x5   :  { %619 = vmatprep.subr.bf16.mxu0 %v697_v4  ;;  %v704_v11 = vld [vmem:[%s947_s1 + $0x98] sm:$0xff]   ;;  %v707_v14 = vld [vmem:[%s947_s1 + $0xa0] sm:$0xff]   ;;  %v710_v17 = vld [vmem:[%s947_s1 + $0xa8] sm:$0xff]  }
   0x6   :  { %v705_v12 = vld [vmem:[%s947_s1 + $0x18] sm:$0xff]   ;;  %v708_v15 = vld [vmem:[%s947_s1 + $0x20] sm:$0xff]   ;;  %v711_v18 = vld [vmem:[%s947_s1 + $0x28] sm:$0xff]  }
   0x7   :  { %296 = vmatpush1.bf16.msra.mxu1 %v698_v5  ;;  %v712_v19 = vld [vmem:[%s947_s1 + $0x70] sm:$0xff]   ;;  %v27_v22 = vld [vmem:[%s948_s0] sm:$0xff]  ;;  %v715_v23 = vld [vmem:[%s947_s1 + $0x78] sm:$0xff]  }
   0x8   :  { %620 = vmatpush3.bf16.msra.mxu0 %v699_v6  ;;  %297 = vmatprep.subr.bf16.mxu1 %v741_v0  ;;  %v713_v20 = vld [vmem:[%s947_s1 + $0xb0] sm:$0xff]   ;;  %v570_v24 = vcombine.high %v27_v22, %v27_v22  ;;  %v28_v25 = vld [vmem:[%s948_s0 + $0x8] sm:$0xff]  ;;  %v716_v27 = vld [vmem:[%s947_s1 + $0xb8] sm:$0xff]   ;;  %v569_v30 = vcombine.low %v27_v22, %v27_v22 }
   0x9   :  { %621 = vmatprep.subr.bf16.mxu0 %v700_v7  ;;  %v714_v21 = vld [vmem:[%s947_s1 + $0x30] sm:$0xff]   ;;  %v572_v26 = vcombine.high %v28_v25, %v28_v25  ;;  %v717_v28 = vld [vmem:[%s947_s1 + $0x38] sm:$0xff]   ;;  %v720_v29 = vld [vmem:[%s947_s1 + $0xc0] sm:$0xff]   ;;  %v571_v33 = vcombine.low %v28_v25, %v28_v25 }
   0xa   :  { %285 = vmatprep.mubr.bf16.mxu0 %v570_v24  ;;  %v723_v31 = vld [vmem:[%s949_s3] sm:$0xff]   ;;  %v724_v34 = vld [vmem:[%s949_s3 + $0x8] sm:$0xff]   ;;  %v725_v35 = vld [vmem:[%s949_s3 + $0x10] sm:$0xff]  }
   0xb   :  { %298 = vmatpush1.bf16.msra.mxu1 %v701_v8  ;;  %598 = vmatprep.mubr.msk.bf16.mxu1 %vm249_vm0, %v572_v26  ;;  %v726_v36 = vld [vmem:[%s949_s3 + $0x18] sm:$0xff]   ;;  %v727_v37 = vld [vmem:[%s949_s3 + $0x20] sm:$0xff]   ;;  %v728_v38 = vld [vmem:[%s949_s3 + $0x28] sm:$0xff]  }
   0xc   :  { %622 = vmatpush3.bf16.msra.mxu0 %v702_v9  ;;  %299 = vmatprep.subr.bf16.mxu1 %v741_v0  ;;  %v729_v39 = vld [vmem:[%s949_s3 + $0x30] sm:$0xff]   ;;  %v730_v40 = vld [vmem:[%s949_s3 + $0x38] ss:$0 sps:$4 sm:$0xff]   ;;  %v731_v42 = vld [vmem:[%s950_s5] sm:$0xff]  }
   0xd   :  { %623 = vmatprep.subr.bf16.mxu0 %v703_v10  ;;  %v408_v41 = vsel %vm406_vm1, %v730_v40, 0  ;;  %v732_v43 = vld [vmem:[%s950_s5 + $0x8] sm:$0xff]   ;;  %v733_v44 = vld [vmem:[%s950_s5 + $0x10] sm:$0xff]   ;;  %v734_v45 = vld [vmem:[%s950_s5 + $0x18] sm:$0xff]  }
   0xe   :  { %v568_v48 = vld [vmem:[%s951_s2] ss:$0 sm:$0xff]  ;;  %v736_v61 = vld [vmem:[%s950_s5 + $0x28] ss:$0 sps:$4 sm:$0x33]  }
   0xf   :  { %300 = vmatpush1.bf16.msra.mxu1 %v704_v11  ;;  %v735_v60 = vld [vmem:[%s950_s5 + $0x20] sm:$0xff]   ;;  %v509_v62 = vsel %vm507_vm4, %v736_v61, 0 }
  0x10   :  { %624 = vmatpush3.bf16.msra.mxu0 %v705_v12  ;;  %301 = vmatprep.subr.bf16.mxu1 %v741_v0  ;;  %v599_v63 = vld [vmem:[%s952_s4] ss:$0 sm:$0xff] }
  0x11   :  { %625 = vmatprep.subr.bf16.mxu0 %v706_v13  ;;  %v609_v7 = vld [vmem:[%s953_s6] ss:$0 sm:$0xff] }
  0x13   :  { %302 = vmatpush1.bf16.msra.mxu1 %v707_v14 }
  0x14   :  { %626 = vmatpush3.bf16.msra.mxu0 %v708_v15  ;;  %303 = vmatprep.subr.bf16.mxu1 %v741_v0 }
  0x15   :  { %627 = vmatprep.subr.bf16.mxu0 %v709_v16 }
  0x17   :  { %304 = vmatpush1.bf16.msra.mxu1 %v710_v17 }
  0x18   :  { %628 = vmatpush3.bf16.msra.mxu0 %v711_v18  ;;  %305 = vmatprep.subr.bf16.mxu1 %v741_v0 }
  0x19   :  { %629 = vmatprep.subr.bf16.mxu0 %v712_v19 }
  0x1b   :  { %306 = vmatpush1.bf16.msra.mxu1 %v713_v20 }
  0x1c   :  { %630 = vmatpush3.bf16.msra.mxu0 %v714_v21  ;;  %307 = vmatprep.subr.bf16.mxu1 %v741_v0 }
  0x1d   :  { %631 = vmatprep.subr.bf16.mxu0 %v715_v23 }
  0x1f   :  { %308 = vmatpush1.bf16.msra.mxu1 %v716_v27 }
  0x20   :  { %632 = vmatpush3.bf16.msra.mxu0 %v717_v28  ;;  %309 = vmatprep.subr.bf16.mxu1 %v741_v0 }
  0x21   :  { %655 = vmatprep.subr.bf16.mxu0 %v742_v32 }
  0x23   :  { %286 = vmatmul.mubr.bf16.vlgmr.msra.gmra.mrb[0].mxu0 %v569_v30  ;;  %310 = vmatpush1.bf16.msra.mxu1 %v720_v29 }
  0x24   :  { %656 = vmatpush3.bf16.msra.mxu0 %v723_v31  ;;  %675 = vmatprep.subr.bf16.mxu1 %v742_v32 }
  0x25   :  { %657 = vmatprep.subr.bf16.mxu0 %v742_v32  ;;  %671 = vmatprep.mubr.msk.bf16.mxu0 %vm743_vm2, %v742_v32 }
  0x26   :  { %326 = vmatmul.mubr.bf16.vlgmr.msra.gmra.mrb[0].mxu1 %v571_v33 }
  0x27   :  { %687 = vmatprep.mubr.msk.bf16.mxu1 %vm743_vm2, %v742_v32  ;;  %676 = vmatpush3.bf16.msra.mxu1 %v731_v42 }
  0x28   :  { %658 = vmatpush3.bf16.msra.mxu0 %v724_v34  ;;  %677 = vmatprep.subr.bf16.mxu1 %v742_v32 }
  0x29   :  { %659 = vmatprep.subr.bf16.mxu0 %v742_v32 }
  0x2b   :  { %678 = vmatpush3.bf16.msra.mxu1 %v732_v43 }
  0x2c   :  { %660 = vmatpush3.bf16.msra.mxu0 %v725_v35  ;;  %679 = vmatprep.subr.bf16.mxu1 %v742_v32 }
  0x2d   :  { %661 = vmatprep.subr.bf16.mxu0 %v742_v32 }
  0x2f   :  { %680 = vmatpush3.bf16.msra.mxu1 %v733_v44 }
  0x30   :  { %662 = vmatpush3.bf16.msra.mxu0 %v726_v36  ;;  %681 = vmatprep.subr.bf16.mxu1 %v742_v32 }
  0x31   :  { %663 = vmatprep.subr.bf16.mxu0 %v742_v32 }
  0x33   :  { %682 = vmatpush3.bf16.msra.mxu1 %v734_v45 }
  0x34   :  { %664 = vmatpush3.bf16.msra.mxu0 %v727_v37  ;;  %683 = vmatprep.subr.bf16.mxu1 %v742_v32 }
  0x35   :  { %665 = vmatprep.subr.bf16.mxu0 %v742_v32 }
  0x37   :  { %684 = vmatpush3.bf16.msra.mxu1 %v735_v60 }
  0x38   :  { %666 = vmatpush3.bf16.msra.mxu0 %v728_v38  ;;  %685 = vmatprep.subr.bf16.mxu1 %v742_v32 }
  0x39   :  { %667 = vmatprep.subr.bf16.mxu0 %v742_v32 }
  0x3b   :  { %686 = vmatpush3.bf16.msra.mxu1 %v509_v62 }
  0x3c   :  { %668 = vmatpush3.bf16.msra.mxu0 %v729_v39 }
  0x3d   :  { %669 = vmatprep.subr.bf16.mxu0 %v742_v32 }
  0x40   :  { %670 = vmatpush3.bf16.msra.mxu0 %v408_v41 }
  0xf6   :  { %v633_v46 = vpop.f32.mrb[0].mxu0 }
  0xf7   :  { %v634_v47 = vpop.f32.mrb[1].mxu0 }
  0xf8   :  { %v635_v49 = vadd.f32 %v634_v47, %v633_v46  ;;  %v636_v50 = vpop.f32.mrb[2].mxu0 }
  0xf9   :  { %v637_v51 = vpop.f32.mrb[3].mxu0  ;;  %v327_v52 = vpop.f32.mrb[0].mxu1 }
  0xfa   :  { %v288_v53 = vadd.f32 %v635_v49, %v568_v48  ;;  %v329_v54 = vpop.f32.mrb[1].mxu1 }
  0xfb   :  { %v330_v55 = vpop.f32.mrb[2].mxu1 }
  0xfc   :  { %v328_v56 = vadd.f32 %v327_v52, %v288_v53  ;;  %v331_v57 = vpop.f32.mrb[3].mxu1 }
  0xfe   :  { %v333_v58 = vmax.f32 %v328_v56, 0.0 }
 0x100   :  { %v334_v59 = vpack.c.bf16 %v333_v58, %v333_v58 }
 0x102   :  { %672 = vmatmul.mubr.msk.bf16.vlgmr.msra.gmra.mrb[4].mxu0 %vm402_vm3, %v334_v59 }
 0x1d5   :  { %v444_v0 = vpop.f32.mrb[4].mxu0 }
 0x1d6   :  { %v445_v1 = vadd.f32 %v599_v63, %v444_v0  ;;  %v673_v2 = vpop.f32.mrb[5].mxu0 }
 0x1d7   :  { %v447_v3 = vpop.f32.mrb[6].mxu0 }
 0x1d8   :  { %v450_v4 = vmax.f32 %v445_v1, 0.0  ;;  %v674_v5 = vpop.f32.mrb[7].mxu0 }
 0x1da   :  { %v451_v6 = vpack.c.bf16 %v450_v4, %v450_v4 }
 0x1dc   :  { %688 = vmatmul.mubr.msk.bf16.vlgmr.msra.gmra.mrb[4].mxu1 %vm503_vm5, %v451_v6 }
 0x2af   :  { %v545_v8 = vpop.f32.mrb[4].mxu1 }
 0x2b0   :  { %v546_v9 = vadd.f32 %v609_v7, %v545_v8  ;;  %v689_v10 = vpop.f32.mrb[5].mxu1 }
 0x2b1   :  { %v548_v11 = vpop.f32.mrb[6].mxu1 }
 0x2b2   :  { %v690_v12 = vpop.f32.mrb[7].mxu1  ;;  %v552_v13 = vsel %vm551_vm6, %v546_v9, -inf }
 0x2b3   :  { %553 = vmax.xlane.f32.xlu0 %v552_v13 }
 0x340   :  { %v554_v14 = vpop.xlane.xlu0 %553 }
 0x341   :  { %v555_v15 = vsub.f32 %v546_v9, %v554_v14 }
 0x343   :  { %v556_v16 = vmul.f32 1.442695, %v555_v15 }
 0x345   :  { %737 = vpow2.f32 %v556_v16 }
 0x34f   :  { %v738_v17 = vpop.eup %737 }
 0x350   :  { %v558_v18 = vsel %vm551_vm6, %v738_v17, 0.0 }
 0x351   :  { %559 = vadd.xlane.f32.xlu0 %v558_v18 }
 0x3de   :  { %v560_v19 = vpop.xlane.xlu0 %559 }
 0x3df   :  { %739 = vrcp.f32 %v560_v19 }
 0x3e9   :  { %v740_v20 = vpop.eup %739 }
 0x3ea   :  { %v562_v21 = vmul.f32 %v740_v20, %v738_v17 }
 0x3ec   :  { %563 = vst.msk [vmem:[%s954_s7] sm:$0xff] %vm551_vm6, %v562_v21 }

</bundles_post_ra>
